<compile_context>
chip_gen: v6e
topology: v6e:2x2x1
jax: 0.10.0
libtpu: 0.0.40
codegen_flags: <defaults>
</compile_context>

<pallas_src>
import functools

import jax
import jax.numpy as jnp
import numpy as np
from jax.experimental import pallas as pl
from jax.experimental.pallas import tpu as pltpu


# ----------------------------------------------------------------------------
# weight packing / flattening helpers
# ----------------------------------------------------------------------------
def _num_weight_refs(L):
    # attn: w_ah, w_ae, b_a, v | layer0: 2 wx + whh + b | layers>0: wx + whh + b | fc: 3
    return 4 + 4 + 3 * (L - 1) + 3


def _flatten_weights(pp, L):
    flat = [pp["w_ah"], pp["w_ae"], pp["b_a"], pp["v"]]
    for l in range(L):
        lw = pp["lstm"][l]
        flat += list(lw["wx"]) + [lw["whh"], lw["b"]]
    flat += [pp["w_fc_out"], pp["w_fc_ctx"], pp["b_fc"]]
    return flat


def _unpack_weights(w_refs, L):
    """Load packed weight refs into f32 values, in the order _flatten_weights emits them."""
    f32 = jnp.float32
    it = iter(w_refs)

    def nxt():
        return next(it)[...].astype(f32)

    w = {"w_ah": nxt(), "w_ae": nxt(), "b_a": nxt(), "v": nxt(), "lstm": []}
    for l in range(L):
        wx = [nxt() for _ in range(2 if l == 0 else 1)]
        w["lstm"].append({"wx": wx, "whh": nxt(), "b": nxt()})
    w["w_fc_out"] = nxt()
    w["w_fc_ctx"] = nxt()
    w["b_fc"] = nxt()
    return w


# ----------------------------------------------------------------------------
# shared per-step compute (pure values, f32)
# ----------------------------------------------------------------------------
def _decoder_step(emb, enc, h_prev, c_prev, w, B, S, H, L):
    """One decode step: Bahdanau attention + L-layer LSTM cell + fc. All inputs f32 values."""
    f32 = jnp.float32

    # --- attention: energy = tanh([h_last | enc] @ W_attn.T + b) -------------
    h_last = h_prev[L - 1]                                                        # (B, H)
    hid_part = jnp.dot(h_last, w["w_ah"], preferred_element_type=f32) + w["b_a"]  # bias folded here
    e_flat = jnp.dot(enc.reshape(B * S, H), w["w_ae"], preferred_element_type=f32)
    energy = jnp.tanh(e_flat.reshape(B, S, H) + hid_part[:, None, :])             # (B, S, H)
    # scores / context via MXU dots instead of XLU reductions
    scores = jnp.dot(energy.reshape(B * S, H), w["v"],
                     preferred_element_type=f32).reshape(B, S)                    # (B, S)
    scores = scores - jnp.max(scores, axis=1, keepdims=True)
    expw = jnp.exp(scores)
    attn = expw / jnp.sum(expw, axis=1, keepdims=True)                            # exact softmax
    ctx = jnp.einsum("bqs,bsh->bqh", attn[:, None, :], enc,
                     preferred_element_type=f32)[:, 0, :]                         # (B, H)

    # --- multi-layer LSTM cell, single time step (PyTorch gate order i,f,g,o) -
    xs = [emb, ctx]                       # layer-0 input kept split (no lane concat)
    h_new, c_new = [], []
    for l in range(L):
        lw = w["lstm"][l]
        gates = lw["b"]
        for xi, wxi in zip(xs, lw["wx"]):
            gates = gates + jnp.dot(xi, wxi, preferred_element_type=f32)
        gates = gates + jnp.dot(h_prev[l], lw["whh"], preferred_element_type=f32)  # (B, 4H)
        i_g = jax.nn.sigmoid(gates[:, 0 * H:1 * H])
        f_g = jax.nn.sigmoid(gates[:, 1 * H:2 * H])
        g_g = jnp.tanh(gates[:, 2 * H:3 * H])
        o_g = jax.nn.sigmoid(gates[:, 3 * H:4 * H])
        c = f_g * c_prev[l] + i_g * g_g
        h = o_g * jnp.tanh(c)
        h_new.append(h)
        c_new.append(c)
        xs = [h]                          # inter-layer dropout = identity (eval mode)

    # --- fc(cat(output, context)) as two split dots ---------------------------
    pred = (jnp.dot(xs[0], w["w_fc_out"], preferred_element_type=f32)
            + jnp.dot(ctx, w["w_fc_ctx"], preferred_element_type=f32)
            + w["b_fc"])                                                          # (B, O)
    return pred, h_new, c_new


# ----------------------------------------------------------------------------
# kernels
# ----------------------------------------------------------------------------
def _make_single_step_kernel(B, S, H, E, L, n_w):
    def kernel(*refs):
        f32 = jnp.float32
        emb_ref, hid_ref, cell_ref, enc_ref = refs[0:4]
        w = _unpack_weights(refs[4:4 + n_w], L)
        pred_ref, hout_ref, cout_ref = refs[4 + n_w:4 + n_w + 3]

        emb = emb_ref[...].astype(f32)
        enc = enc_ref[...].astype(f32)
        # load state before any store (hidden/cell are aliased to hout/cout)
        h_prev = [hid_ref[l].astype(f32) for l in range(L)]
        c_prev = [cell_ref[l].astype(f32) for l in range(L)]

        pred, h_new, c_new = _decoder_step(emb, enc, h_prev, c_prev, w, B, S, H, L)

        for l in range(L):
            hout_ref[l] = h_new[l].astype(hout_ref.dtype)
            cout_ref[l] = c_new[l].astype(cout_ref.dtype)
        pred_ref[...] = pred.astype(pred_ref.dtype)

    return kernel


def _make_fused_kernel(B, S, H, E, L, n_w):
    def kernel(*refs):
        f32 = jnp.float32
        emb_ref, hid_ref, cell_ref, enc_ref = refs[0:4]
        w = _unpack_weights(refs[4:4 + n_w], L)
        pred_ref, hout_ref, cout_ref = refs[4 + n_w:4 + n_w + 3]
        h_state, c_state = refs[4 + n_w + 3:4 + n_w + 5]
        t = pl.program_id(0)

        @pl.when(t == 0)
        def _():
            h_state[...] = hid_ref[...].astype(f32)
            c_state[...] = cell_ref[...].astype(f32)

        emb = emb_ref[0].astype(f32)
        enc = enc_ref[...].astype(f32)
        h_prev = [h_state[l] for l in range(L)]
        c_prev = [c_state[l] for l in range(L)]

        pred, h_new, c_new = _decoder_step(emb, enc, h_prev, c_prev, w, B, S, H, L)

        for l in range(L):
            h_state[l] = h_new[l]
            c_state[l] = c_new[l]
        pred_ref[0] = pred.astype(pred_ref.dtype)

        @pl.when(t == pl.num_programs(0) - 1)
        def _():
            hout_ref[...] = h_state[...].astype(hout_ref.dtype)
            cout_ref[...] = c_state[...].astype(cout_ref.dtype)

    return kernel


# ----------------------------------------------------------------------------
# parameter construction / packing
# ----------------------------------------------------------------------------
def init_params(key, output_dim, emb_dim, hidden_dim, num_layers):
    """Deterministic synthetic parameters (same shapes as the PyTorch module)."""
    ks = list(jax.random.split(key, 8 + 4 * num_layers))
    p = {}
    p["embedding"] = jax.random.normal(ks[0], (output_dim, emb_dim), jnp.float32) * 0.1
    p["W_attn"] = jax.random.normal(ks[1], (hidden_dim, 2 * hidden_dim), jnp.float32) * 0.1
    p["b_attn"] = jax.random.normal(ks[2], (hidden_dim,), jnp.float32) * 0.1
    p["v"] = jax.random.uniform(ks[3], (hidden_dim,), jnp.float32)
    p["lstm"] = []
    for l in range(num_layers):
        in_l = emb_dim + hidden_dim if l == 0 else hidden_dim
        base = 4 + 4 * l
        Wih = jax.random.normal(ks[base + 0], (4 * hidden_dim, in_l), jnp.float32) * 0.1
        Whh = jax.random.normal(ks[base + 1], (4 * hidden_dim, hidden_dim), jnp.float32) * 0.1
        bih = jax.random.normal(ks[base + 2], (4 * hidden_dim,), jnp.float32) * 0.1
        bhh = jax.random.normal(ks[base + 3], (4 * hidden_dim,), jnp.float32) * 0.1
        p["lstm"].append((Wih, Whh, bih, bhh))
    p["W_fc"] = jax.random.normal(ks[4 + 4 * num_layers], (output_dim, 2 * hidden_dim), jnp.float32) * 0.1
    p["b_fc"] = jax.random.normal(ks[5 + 4 * num_layers], (output_dim,), jnp.float32) * 0.1
    return p


def prepare_params(params, weight_dtype=jnp.bfloat16):
    """One-time weight packing so the kernel only does plain split `x @ W` dots.

    All transposes, gate-weight splits, bias fusion and the bf16 cast are hoisted out of
    the hot path; matrices are stored bf16 (half the DMA bytes), small biases stay f32.
    """
    H = params["W_attn"].shape[0]
    O = params["W_fc"].shape[0]
    wd = weight_dtype
    pp = {"embedding": jnp.asarray(params["embedding"], jnp.float32)}
    W_attn = jnp.asarray(params["W_attn"])                     # (H, 2H)
    pp["w_ah"] = W_attn[:, :H].T.astype(wd)                    # hidden part of attn linear
    pp["w_ae"] = W_attn[:, H:].T.astype(wd)                    # encoder part
    pp["b_a"] = jnp.asarray(params["b_attn"]).reshape(1, H).astype(jnp.float32)
    pp["v"] = jnp.asarray(params["v"]).reshape(H, 1).astype(wd)
    pp["lstm"] = []
    for l, (Wih, Whh, bih, bhh) in enumerate(params["lstm"]):
        WihT = jnp.asarray(Wih).T                              # (in_l, 4H)
        if l == 0:
            E = WihT.shape[0] - H
            wx = [WihT[:E].astype(wd), WihT[E:].astype(wd)]    # emb part | ctx part (no concat in kernel)
        else:
            wx = [WihT.astype(wd)]
        pp["lstm"].append({
            "wx": wx,
            "whh": jnp.asarray(Whh).T.astype(wd),
            "b": (jnp.asarray(bih) + jnp.asarray(bhh)).reshape(1, 4 * H).astype(jnp.float32),
        })
    W_fc_T = jnp.asarray(params["W_fc"]).T                     # (2H, O)
    pp["w_fc_out"] = W_fc_T[:H].astype(wd)
    pp["w_fc_ctx"] = W_fc_T[H:].astype(wd)
    pp["b_fc"] = jnp.asarray(params["b_fc"]).reshape(1, O).astype(jnp.float32)
    return pp


# ----------------------------------------------------------------------------
# wrappers
# ----------------------------------------------------------------------------
@functools.partial(jax.jit, static_argnames=("num_layers",))
def decoder_pallas(prepped, tokens, hidden, cell, encoder_outputs, *, num_layers):
    """Single decode step — exactly the PyTorch Decoder.forward (eval mode)."""
    L = num_layers
    B = tokens.shape[0]
    _, _, H = hidden.shape
    S = encoder_outputs.shape[1]
    O, E = prepped["embedding"].shape

    embedded = prepped["embedding"][tokens]                    # (B, E) gather; dropout = identity
    flat_w = _flatten_weights(prepped, L)
    inputs = [embedded, hidden, cell, encoder_outputs] + flat_w

    vmem = pl.BlockSpec(memory_space=pltpu.MemorySpace.VMEM)
    out_shape = (
        jax.ShapeDtypeStruct((B, O), jnp.float32),             # prediction
        jax.ShapeDtypeStruct((L, B, H), jnp.float32),          # hidden out (aliases hidden in)
        jax.ShapeDtypeStruct((L, B, H), jnp.float32),          # cell out   (aliases cell in)
    )
    return pl.pallas_call(
        _make_single_step_kernel(B, S, H, E, L, len(flat_w)),
        out_shape=out_shape,
        in_specs=[vmem] * len(inputs),
        out_specs=(vmem, vmem, vmem),
        input_output_aliases={1: 1, 2: 2},                     # in-place state update
    )(*inputs)


@functools.partial(jax.jit, static_argnames=("num_layers",))
def decoder_pallas_fused(prepped, tokens_seq, hidden, cell, encoder_outputs, *, num_layers):
    """Teacher-forced T-step decode fused into one pallas_call (grid=(T,)).

    Weights + encoder outputs stay VMEM-resident across steps (constant index_maps),
    h/c is carried in VMEM scratch, per-step embeddings stream via a (1,B,E) block,
    per-step predictions stream out via a (1,B,O) block.
    """
    L = num_layers
    T, B = tokens_seq.shape
    _, _, H = hidden.shape
    S = encoder_outputs.shape[1]
    O, E = prepped["embedding"].shape

    emb_seq = prepped["embedding"][tokens_seq]                 # (T, B, E): one gather for all steps
    flat_w = _flatten_weights(prepped, L)

    def resident(a):                                           # same block every step -> DMA'd once
        return pl.BlockSpec(a.shape, lambda t, nd=a.ndim: (0,) * nd)

    in_specs = [pl.BlockSpec((1, B, E), lambda t: (t, 0, 0)),       # per-step embedding
                pl.BlockSpec((L, B, H), lambda t: (0, 0, 0)),       # initial hidden
                pl.BlockSpec((L, B, H), lambda t: (0, 0, 0)),       # initial cell
                pl.BlockSpec((B, S, H), lambda t: (0, 0, 0))]       # encoder outputs (resident)
    in_specs += [resident(wa) for wa in flat_w]
    out_specs = (pl.BlockSpec((1, B, O), lambda t: (t, 0, 0)),      # per-step prediction
                 pl.BlockSpec((L, B, H), lambda t: (0, 0, 0)),      # final hidden
                 pl.BlockSpec((L, B, H), lambda t: (0, 0, 0)))      # final cell
    out_shape = (jax.ShapeDtypeStruct((T, B, O), jnp.float32),
                 jax.ShapeDtypeStruct((L, B, H), jnp.float32),
                 jax.ShapeDtypeStruct((L, B, H), jnp.float32))

    grid_spec = pltpu.PrefetchScalarGridSpec(
        num_scalar_prefetch=0,
        grid=(T,),
        in_specs=in_specs,
        out_specs=out_specs,
        scratch_shapes=[pltpu.VMEM((L, B, H), jnp.float32),         # h state carried across steps
                        pltpu.VMEM((L, B, H), jnp.float32)],        # c state carried across steps
    )
    return pl.pallas_call(
        _make_fused_kernel(B, S, H, E, L, len(flat_w)),
        out_shape=out_shape,
        grid_spec=grid_spec,
        compiler_params=pltpu.CompilerParams(
            dimension_semantics=("arbitrary",)),                    # sequential carry over time
    )(emb_seq, hidden, cell, encoder_outputs, *flat_w)


# ----------------------------------------------------------------------------
# pure-JAX reference (mirrors the PyTorch forward, eval mode)
# ----------------------------------------------------------------------------
def decoder_reference(params, tokens, hidden, cell, encoder_outputs, num_layers):
    H = hidden.shape[-1]
    emb = params["embedding"][tokens]                          # (B, E)
    S = encoder_outputs.shape[1]
    h_last = hidden[-1]                                        # (B, H)
    hid_rep = jnp.repeat(h_last[:, None, :], S, axis=1)        # (B, S, H)
    cat = jnp.concatenate([hid_rep, encoder_outputs], axis=2)  # (B, S, 2H)
    energy = jnp.tanh(jnp.einsum("bsk,hk->bsh", cat, params["W_attn"]) + params["b_attn"])
    scores = jnp.sum(params["v"] * energy, axis=2)             # (B, S)
    attn = jax.nn.softmax(scores, axis=1)
    ctx = jnp.einsum("bs,bsh->bh", attn, encoder_outputs)      # (B, H)
    x = jnp.concatenate([emb, ctx], axis=1)
    new_h, new_c = [], []
    for l in range(num_layers):
        Wih, Whh, bih, bhh = params["lstm"][l]
        gates = x @ Wih.T + hidden[l] @ Whh.T + bih + bhh
        i_g = jax.nn.sigmoid(gates[:, 0 * H:1 * H])
        f_g = jax.nn.sigmoid(gates[:, 1 * H:2 * H])
        g_g = jnp.tanh(gates[:, 2 * H:3 * H])
        o_g = jax.nn.sigmoid(gates[:, 3 * H:4 * H])
        c = f_g * cell[l] + i_g * g_g
        h = o_g * jnp.tanh(c)
        new_h.append(h)
        new_c.append(c)
        x = h
    pred = jnp.concatenate([x, ctx], axis=1) @ params["W_fc"].T + params["b_fc"]
    return pred, jnp.stack(new_h), jnp.stack(new_c)


if __name__ == "__main__":
    # small, module-consistent sizes
    B, S, T = 2, 8, 4
    output_dim, emb_dim, hidden_dim, num_layers = 32, 16, 32, 2
    dropout = 0.1  # identity in eval mode  # TODO(synk): training-mode dropout not implemented

    key = jax.random.PRNGKey(0)
    kp, k1, k2, k3, k4, k5 = jax.random.split(key, 6)
    params = init_params(kp, output_dim, emb_dim, hidden_dim, num_layers)
    prepped = prepare_params(params)   # one-time packing: split / transposed / bf16 weights

    tokens = jax.random.randint(k1, (B,), 0, output_dim, dtype=jnp.int32)
    hidden = jax.random.normal(k2, (num_layers, B, hidden_dim), jnp.float32)
    cell = jax.random.normal(k3, (num_layers, B, hidden_dim), jnp.float32)
    encoder_outputs = jax.random.normal(k4, (B, S, hidden_dim), jnp.float32)

    # --- single step (exactly the PyTorch Decoder.forward) -------------------
    pred, h_out, c_out = decoder_pallas(
        prepped, tokens, hidden, cell, encoder_outputs, num_layers=num_layers)
    jax.block_until_ready((pred, h_out, c_out))

    pred_r, h_r, c_r = decoder_reference(
        params, tokens, hidden, cell, encoder_outputs, num_layers)
    # bf16 weight storage (f32 accumulation) => slightly wider tolerance than pure f32
    np.testing.assert_allclose(np.asarray(pred), np.asarray(pred_r), rtol=2e-2, atol=2e-2)
    np.testing.assert_allclose(np.asarray(h_out), np.asarray(h_r), rtol=2e-2, atol=2e-2)
    np.testing.assert_allclose(np.asarray(c_out), np.asarray(c_r), rtol=2e-2, atol=2e-2)

    # --- fused T-step teacher-forced decode (weights stay VMEM-resident) -----
    tokens_seq = jax.random.randint(k5, (T, B), 0, output_dim, dtype=jnp.int32)
    preds_f, h_f, c_f = decoder_pallas_fused(
        prepped, tokens_seq, hidden, cell, encoder_outputs, num_layers=num_layers)
    jax.block_until_ready((preds_f, h_f, c_f))

    h_ref, c_ref = hidden, cell
    preds_ref = []
    for t in range(T):
        p_t, h_ref, c_ref = decoder_reference(
            params, tokens_seq[t], h_ref, c_ref, encoder_outputs, num_layers)
        preds_ref.append(p_t)
    preds_ref = jnp.stack(preds_ref)
    np.testing.assert_allclose(np.asarray(preds_f), np.asarray(preds_ref), rtol=2e-2, atol=2e-2)
    np.testing.assert_allclose(np.asarray(h_f), np.asarray(h_ref), rtol=2e-2, atol=2e-2)
    np.testing.assert_allclose(np.asarray(c_f), np.asarray(c_ref), rtol=2e-2, atol=2e-2)

    print("KERNEL_OK")
</pallas_src>

<mosaic_0001>
module attributes {stable_mosaic.version = 11 : i64} {
  func.func @kernel(%arg0: memref<2x16xf32, #tpu.memory_space<vmem>>, %arg1: memref<2x2x32xf32, #tpu.memory_space<vmem>>, %arg2: memref<2x2x32xf32, #tpu.memory_space<vmem>>, %arg3: memref<2x8x32xf32, #tpu.memory_space<vmem>>, %arg4: memref<32x32xbf16, #tpu.memory_space<vmem>>, %arg5: memref<32x32xbf16, #tpu.memory_space<vmem>>, %arg6: memref<1x32xf32, #tpu.memory_space<vmem>>, %arg7: memref<32x1xbf16, #tpu.memory_space<vmem>>, %arg8: memref<16x128xbf16, #tpu.memory_space<vmem>>, %arg9: memref<32x128xbf16, #tpu.memory_space<vmem>>, %arg10: memref<32x128xbf16, #tpu.memory_space<vmem>>, %arg11: memref<1x128xf32, #tpu.memory_space<vmem>>, %arg12: memref<32x128xbf16, #tpu.memory_space<vmem>>, %arg13: memref<32x128xbf16, #tpu.memory_space<vmem>>, %arg14: memref<1x128xf32, #tpu.memory_space<vmem>>, %arg15: memref<32x32xbf16, #tpu.memory_space<vmem>>, %arg16: memref<32x32xbf16, #tpu.memory_space<vmem>>, %arg17: memref<1x32xf32, #tpu.memory_space<vmem>>, %arg18: memref<2x32xf32, #tpu.memory_space<vmem>>, %arg19: memref<2x2x32xf32, #tpu.memory_space<vmem>>, %arg20: memref<2x2x32xf32, #tpu.memory_space<vmem>>) attributes {dimension_semantics = [], scalar_prefetch = 0 : i64, scratch_operands = 0 : i64, tpu.core_type = #tpu.core_type<tc>} {
    %c0 = arith.constant 0 : index
    %c0_0 = arith.constant 0 : index
    %0 = vector.load %arg4[%c0, %c0_0] : memref<32x32xbf16, #tpu.memory_space<vmem>>, vector<32x32xbf16>
    %1 = arith.extf %0 : vector<32x32xbf16> to vector<32x32xf32>
    %c0_1 = arith.constant 0 : index
    %c0_2 = arith.constant 0 : index
    %2 = vector.load %arg5[%c0_1, %c0_2] : memref<32x32xbf16, #tpu.memory_space<vmem>>, vector<32x32xbf16>
    %3 = arith.extf %2 : vector<32x32xbf16> to vector<32x32xf32>
    %c0_3 = arith.constant 0 : index
    %c0_4 = arith.constant 0 : index
    %4 = vector.load %arg6[%c0_3, %c0_4] : memref<1x32xf32, #tpu.memory_space<vmem>>, vector<1x32xf32>
    %c0_5 = arith.constant 0 : index
    %c0_6 = arith.constant 0 : index
    %5 = vector.load %arg7[%c0_5, %c0_6] : memref<32x1xbf16, #tpu.memory_space<vmem>>, vector<32x1xbf16>
    %6 = arith.extf %5 : vector<32x1xbf16> to vector<32x1xf32>
    %c0_7 = arith.constant 0 : index
    %c0_8 = arith.constant 0 : index
    %7 = vector.load %arg8[%c0_7, %c0_8] : memref<16x128xbf16, #tpu.memory_space<vmem>>, vector<16x128xbf16>
    %8 = arith.extf %7 : vector<16x128xbf16> to vector<16x128xf32>
    %c0_9 = arith.constant 0 : index
    %c0_10 = arith.constant 0 : index
    %9 = vector.load %arg9[%c0_9, %c0_10] : memref<32x128xbf16, #tpu.memory_space<vmem>>, vector<32x128xbf16>
    %10 = arith.extf %9 : vector<32x128xbf16> to vector<32x128xf32>
    %c0_11 = arith.constant 0 : index
    %c0_12 = arith.constant 0 : index
    %11 = vector.load %arg10[%c0_11, %c0_12] : memref<32x128xbf16, #tpu.memory_space<vmem>>, vector<32x128xbf16>
    %12 = arith.extf %11 : vector<32x128xbf16> to vector<32x128xf32>
    %c0_13 = arith.constant 0 : index
    %c0_14 = arith.constant 0 : index
    %13 = vector.load %arg11[%c0_13, %c0_14] : memref<1x128xf32, #tpu.memory_space<vmem>>, vector<1x128xf32>
    %c0_15 = arith.constant 0 : index
    %c0_16 = arith.constant 0 : index
    %14 = vector.load %arg12[%c0_15, %c0_16] : memref<32x128xbf16, #tpu.memory_space<vmem>>, vector<32x128xbf16>
    %15 = arith.extf %14 : vector<32x128xbf16> to vector<32x128xf32>
    %c0_17 = arith.constant 0 : index
    %c0_18 = arith.constant 0 : index
    %16 = vector.load %arg13[%c0_17, %c0_18] : memref<32x128xbf16, #tpu.memory_space<vmem>>, vector<32x128xbf16>
    %17 = arith.extf %16 : vector<32x128xbf16> to vector<32x128xf32>
    %c0_19 = arith.constant 0 : index
    %c0_20 = arith.constant 0 : index
    %18 = vector.load %arg14[%c0_19, %c0_20] : memref<1x128xf32, #tpu.memory_space<vmem>>, vector<1x128xf32>
    %c0_21 = arith.constant 0 : index
    %c0_22 = arith.constant 0 : index
    %19 = vector.load %arg15[%c0_21, %c0_22] : memref<32x32xbf16, #tpu.memory_space<vmem>>, vector<32x32xbf16>
    %20 = arith.extf %19 : vector<32x32xbf16> to vector<32x32xf32>
    %c0_23 = arith.constant 0 : index
    %c0_24 = arith.constant 0 : index
    %21 = vector.load %arg16[%c0_23, %c0_24] : memref<32x32xbf16, #tpu.memory_space<vmem>>, vector<32x32xbf16>
    %22 = arith.extf %21 : vector<32x32xbf16> to vector<32x32xf32>
    %c0_25 = arith.constant 0 : index
    %c0_26 = arith.constant 0 : index
    %23 = vector.load %arg17[%c0_25, %c0_26] : memref<1x32xf32, #tpu.memory_space<vmem>>, vector<1x32xf32>
    %c0_27 = arith.constant 0 : index
    %c0_28 = arith.constant 0 : index
    %24 = vector.load %arg0[%c0_27, %c0_28] : memref<2x16xf32, #tpu.memory_space<vmem>>, vector<2x16xf32>
    %c0_29 = arith.constant 0 : index
    %c0_30 = arith.constant 0 : index
    %c0_31 = arith.constant 0 : index
    %25 = vector.load %arg3[%c0_29, %c0_30, %c0_31] : memref<2x8x32xf32, #tpu.memory_space<vmem>>, vector<2x8x32xf32>
    %c0_32 = arith.constant 0 : index
    %c0_33 = arith.constant 0 : index
    %c0_34 = arith.constant 0 : index
    %26 = vector.load %arg1[%c0_32, %c0_33, %c0_34] : memref<2x2x32xf32, #tpu.memory_space<vmem>>, vector<1x2x32xf32>
    %27 = vector.shape_cast %26 : vector<1x2x32xf32> to vector<2x32xf32>
    %c1 = arith.constant 1 : index
    %c0_35 = arith.constant 0 : index
    %c0_36 = arith.constant 0 : index
    %28 = vector.load %arg1[%c1, %c0_35, %c0_36] : memref<2x2x32xf32, #tpu.memory_space<vmem>>, vector<1x2x32xf32>
    %29 = vector.shape_cast %28 : vector<1x2x32xf32> to vector<2x32xf32>
    %c0_37 = arith.constant 0 : index
    %c0_38 = arith.constant 0 : index
    %c0_39 = arith.constant 0 : index
    %30 = vector.load %arg2[%c0_37, %c0_38, %c0_39] : memref<2x2x32xf32, #tpu.memory_space<vmem>>, vector<1x2x32xf32>
    %31 = vector.shape_cast %30 : vector<1x2x32xf32> to vector<2x32xf32>
    %c1_40 = arith.constant 1 : index
    %c0_41 = arith.constant 0 : index
    %c0_42 = arith.constant 0 : index
    %32 = vector.load %arg2[%c1_40, %c0_41, %c0_42] : memref<2x2x32xf32, #tpu.memory_space<vmem>>, vector<1x2x32xf32>
    %33 = vector.shape_cast %32 : vector<1x2x32xf32> to vector<2x32xf32>
    %cst = arith.constant dense<0.000000e+00> : vector<2x32xf32>
    %34 = tpu.matmul %29, %1, %cst {dimension_numbers = #tpu.dot_dimension_numbers<[1], [0], [0], [1], [0, 0, 1, 1], [], []>} : vector<2x32xf32>, vector<32x32xf32>, vector<2x32xf32> -> vector<2x32xf32>
    %35 = vector.broadcast %4 : vector<1x32xf32> to vector<2x32xf32>
    %36 = arith.addf %34, %35 : vector<2x32xf32>
    %37 = vector.shape_cast %25 : vector<2x8x32xf32> to vector<16x32xf32>
    %cst_43 = arith.constant dense<0.000000e+00> : vector<16x32xf32>
    %38 = tpu.matmul %37, %3, %cst_43 {dimension_numbers = #tpu.dot_dimension_numbers<[1], [0], [0], [1], [0, 0, 1, 1], [], []>} : vector<16x32xf32>, vector<32x32xf32>, vector<16x32xf32> -> vector<16x32xf32>
    %39 = vector.shape_cast %38 : vector<16x32xf32> to vector<2x8x32xf32>
    %40 = vector.shape_cast %36 : vector<2x32xf32> to vector<2x1x32xf32>
    %41 = vector.broadcast %40 : vector<2x1x32xf32> to vector<2x8x32xf32>
    %42 = arith.addf %39, %41 : vector<2x8x32xf32>
    %43 = math.tanh %42 : vector<2x8x32xf32>
    %44 = vector.shape_cast %43 : vector<2x8x32xf32> to vector<16x32xf32>
    %cst_44 = arith.constant dense<0.000000e+00> : vector<16x1xf32>
    %45 = tpu.matmul %44, %6, %cst_44 {dimension_numbers = #tpu.dot_dimension_numbers<[1], [0], [0], [1], [0, 0, 1, 1], [], []>} : vector<16x32xf32>, vector<32x1xf32>, vector<16x1xf32> -> vector<16x1xf32>
    %46 = vector.shape_cast %45 : vector<16x1xf32> to vector<2x8xf32>
    %cst_45 = arith.constant dense<0xFF800000> : vector<2xf32>
    %47 = vector.multi_reduction <maximumf>, %46, %cst_45 [1] : vector<2x8xf32> to vector<2xf32>
    %48 = vector.shape_cast %47 : vector<2xf32> to vector<2x1xf32>
    %49 = vector.broadcast %48 : vector<2x1xf32> to vector<2x8xf32>
    %50 = arith.subf %46, %49 : vector<2x8xf32>
    %51 = math.exp %50 : vector<2x8xf32>
    %cst_46 = arith.constant dense<0.000000e+00> : vector<2xf32>
    %52 = vector.multi_reduction <add>, %51, %cst_46 [1] : vector<2x8xf32> to vector<2xf32>
    %53 = vector.shape_cast %52 : vector<2xf32> to vector<2x1xf32>
    %54 = vector.broadcast %53 : vector<2x1xf32> to vector<2x8xf32>
    %55 = arith.divf %51, %54 : vector<2x8xf32>
    %56 = vector.shape_cast %55 : vector<2x8xf32> to vector<2x1x8xf32>
    "tpu.trace_start"() <{level = 10 : i32, message = "bqs,bsh->bqh"}> : () -> ()
    %cst_47 = arith.constant dense<0.000000e+00> : vector<2x1x32xf32>
    %57 = tpu.matmul %56, %25, %cst_47 {dimension_numbers = #tpu.dot_dimension_numbers<[2], [1], [1], [2], [0, 0, 0, 1, 1, 2], [0], [0]>} : vector<2x1x8xf32>, vector<2x8x32xf32>, vector<2x1x32xf32> -> vector<2x1x32xf32>
    "tpu.trace_stop"() : () -> ()
    %58 = vector.shape_cast %57 : vector<2x1x32xf32> to vector<2x32xf32>
    %cst_48 = arith.constant dense<0.000000e+00> : vector<2x128xf32>
    %59 = tpu.matmul %24, %8, %cst_48 {dimension_numbers = #tpu.dot_dimension_numbers<[1], [0], [0], [1], [0, 0, 1, 1], [], []>} : vector<2x16xf32>, vector<16x128xf32>, vector<2x128xf32> -> vector<2x128xf32>
    %60 = vector.broadcast %13 : vector<1x128xf32> to vector<2x128xf32>
    %61 = arith.addf %60, %59 : vector<2x128xf32>
    %cst_49 = arith.constant dense<0.000000e+00> : vector<2x128xf32>
    %62 = tpu.matmul %58, %10, %cst_49 {dimension_numbers = #tpu.dot_dimension_numbers<[1], [0], [0], [1], [0, 0, 1, 1], [], []>} : vector<2x32xf32>, vector<32x128xf32>, vector<2x128xf32> -> vector<2x128xf32>
    %63 = arith.addf %61, %62 : vector<2x128xf32>
    %cst_50 = arith.constant dense<0.000000e+00> : vector<2x128xf32>
    %64 = tpu.matmul %27, %12, %cst_50 {dimension_numbers = #tpu.dot_dimension_numbers<[1], [0], [0], [1], [0, 0, 1, 1], [], []>} : vector<2x32xf32>, vector<32x128xf32>, vector<2x128xf32> -> vector<2x128xf32>
    %65 = arith.addf %63, %64 : vector<2x128xf32>
    %66 = vector.extract_strided_slice %65 {offsets = [0, 0], sizes = [2, 32], strides = [1, 1]} : vector<2x128xf32> to vector<2x32xf32>
    %67 = arith.negf %66 : vector<2x32xf32>
    %68 = math.exp %67 : vector<2x32xf32>
    %cst_51 = arith.constant 1.000000e+00 : f32
    %69 = vector.broadcast %cst_51 : f32 to vector<2x32xf32>
    %70 = arith.addf %69, %68 : vector<2x32xf32>
    %71 = arith.divf %69, %70 : vector<2x32xf32>
    %72 = vector.extract_strided_slice %65 {offsets = [0, 32], sizes = [2, 32], strides = [1, 1]} : vector<2x128xf32> to vector<2x32xf32>
    %73 = arith.negf %72 : vector<2x32xf32>
    %74 = math.exp %73 : vector<2x32xf32>
    %cst_52 = arith.constant 1.000000e+00 : f32
    %75 = vector.broadcast %cst_52 : f32 to vector<2x32xf32>
    %76 = arith.addf %75, %74 : vector<2x32xf32>
    %77 = arith.divf %75, %76 : vector<2x32xf32>
    %78 = vector.extract_strided_slice %65 {offsets = [0, 64], sizes = [2, 32], strides = [1, 1]} : vector<2x128xf32> to vector<2x32xf32>
    %79 = math.tanh %78 : vector<2x32xf32>
    %80 = vector.extract_strided_slice %65 {offsets = [0, 96], sizes = [2, 32], strides = [1, 1]} : vector<2x128xf32> to vector<2x32xf32>
    %81 = arith.negf %80 : vector<2x32xf32>
    %82 = math.exp %81 : vector<2x32xf32>
    %cst_53 = arith.constant 1.000000e+00 : f32
    %83 = vector.broadcast %cst_53 : f32 to vector<2x32xf32>
    %84 = arith.addf %83, %82 : vector<2x32xf32>
    %85 = arith.divf %83, %84 : vector<2x32xf32>
    %86 = arith.mulf %77, %31 : vector<2x32xf32>
    %87 = arith.mulf %71, %79 : vector<2x32xf32>
    %88 = arith.addf %86, %87 : vector<2x32xf32>
    %89 = math.tanh %88 : vector<2x32xf32>
    %90 = arith.mulf %85, %89 : vector<2x32xf32>
    %cst_54 = arith.constant dense<0.000000e+00> : vector<2x128xf32>
    %91 = tpu.matmul %90, %15, %cst_54 {dimension_numbers = #tpu.dot_dimension_numbers<[1], [0], [0], [1], [0, 0, 1, 1], [], []>} : vector<2x32xf32>, vector<32x128xf32>, vector<2x128xf32> -> vector<2x128xf32>
    %92 = vector.broadcast %18 : vector<1x128xf32> to vector<2x128xf32>
    %93 = arith.addf %92, %91 : vector<2x128xf32>
    %cst_55 = arith.constant dense<0.000000e+00> : vector<2x128xf32>
    %94 = tpu.matmul %29, %17, %cst_55 {dimension_numbers = #tpu.dot_dimension_numbers<[1], [0], [0], [1], [0, 0, 1, 1], [], []>} : vector<2x32xf32>, vector<32x128xf32>, vector<2x128xf32> -> vector<2x128xf32>
    %95 = arith.addf %93, %94 : vector<2x128xf32>
    %96 = vector.extract_strided_slice %95 {offsets = [0, 0], sizes = [2, 32], strides = [1, 1]} : vector<2x128xf32> to vector<2x32xf32>
    %97 = arith.negf %96 : vector<2x32xf32>
    %98 = math.exp %97 : vector<2x32xf32>
    %cst_56 = arith.constant 1.000000e+00 : f32
    %99 = vector.broadcast %cst_56 : f32 to vector<2x32xf32>
    %100 = arith.addf %99, %98 : vector<2x32xf32>
    %101 = arith.divf %99, %100 : vector<2x32xf32>
    %102 = vector.extract_strided_slice %95 {offsets = [0, 32], sizes = [2, 32], strides = [1, 1]} : vector<2x128xf32> to vector<2x32xf32>
    %103 = arith.negf %102 : vector<2x32xf32>
    %104 = math.exp %103 : vector<2x32xf32>
    %cst_57 = arith.constant 1.000000e+00 : f32
    %105 = vector.broadcast %cst_57 : f32 to vector<2x32xf32>
    %106 = arith.addf %105, %104 : vector<2x32xf32>
    %107 = arith.divf %105, %106 : vector<2x32xf32>
    %108 = vector.extract_strided_slice %95 {offsets = [0, 64], sizes = [2, 32], strides = [1, 1]} : vector<2x128xf32> to vector<2x32xf32>
    %109 = math.tanh %108 : vector<2x32xf32>
    %110 = vector.extract_strided_slice %95 {offsets = [0, 96], sizes = [2, 32], strides = [1, 1]} : vector<2x128xf32> to vector<2x32xf32>
    %111 = arith.negf %110 : vector<2x32xf32>
    %112 = math.exp %111 : vector<2x32xf32>
    %cst_58 = arith.constant 1.000000e+00 : f32
    %113 = vector.broadcast %cst_58 : f32 to vector<2x32xf32>
    %114 = arith.addf %113, %112 : vector<2x32xf32>
    %115 = arith.divf %113, %114 : vector<2x32xf32>
    %116 = arith.mulf %107, %33 : vector<2x32xf32>
    %117 = arith.mulf %101, %109 : vector<2x32xf32>
    %118 = arith.addf %116, %117 : vector<2x32xf32>
    %119 = math.tanh %118 : vector<2x32xf32>
    %120 = arith.mulf %115, %119 : vector<2x32xf32>
    %cst_59 = arith.constant dense<0.000000e+00> : vector<2x32xf32>
    %121 = tpu.matmul %120, %20, %cst_59 {dimension_numbers = #tpu.dot_dimension_numbers<[1], [0], [0], [1], [0, 0, 1, 1], [], []>} : vector<2x32xf32>, vector<32x32xf32>, vector<2x32xf32> -> vector<2x32xf32>
    %cst_60 = arith.constant dense<0.000000e+00> : vector<2x32xf32>
    %122 = tpu.matmul %58, %22, %cst_60 {dimension_numbers = #tpu.dot_dimension_numbers<[1], [0], [0], [1], [0, 0, 1, 1], [], []>} : vector<2x32xf32>, vector<32x32xf32>, vector<2x32xf32> -> vector<2x32xf32>
    %123 = arith.addf %121, %122 : vector<2x32xf32>
    %124 = vector.broadcast %23 : vector<1x32xf32> to vector<2x32xf32>
    %125 = arith.addf %123, %124 : vector<2x32xf32>
    %c0_61 = arith.constant 0 : index
    %c0_62 = arith.constant 0 : index
    %c0_63 = arith.constant 0 : index
    %126 = vector.load %arg19[%c0_61, %c0_62, %c0_63] : memref<2x2x32xf32, #tpu.memory_space<vmem>>, vector<1x2x32xf32>
    %127 = vector.shape_cast %126 : vector<1x2x32xf32> to vector<2x32xf32>
    %128 = vector.shape_cast %90 : vector<2x32xf32> to vector<1x2x32xf32>
    tpu.vector_store %arg19[%c0_61, %c0_62, %c0_63], %128 {strides = array<i32>} : memref<2x2x32xf32, #tpu.memory_space<vmem>>, vector<1x2x32xf32>,
    %c0_64 = arith.constant 0 : index
    %c0_65 = arith.constant 0 : index
    %c0_66 = arith.constant 0 : index
    %129 = vector.load %arg20[%c0_64, %c0_65, %c0_66] : memref<2x2x32xf32, #tpu.memory_space<vmem>>, vector<1x2x32xf32>
    %130 = vector.shape_cast %129 : vector<1x2x32xf32> to vector<2x32xf32>
    %131 = vector.shape_cast %88 : vector<2x32xf32> to vector<1x2x32xf32>
    tpu.vector_store %arg20[%c0_64, %c0_65, %c0_66], %131 {strides = array<i32>} : memref<2x2x32xf32, #tpu.memory_space<vmem>>, vector<1x2x32xf32>,
    %c1_67 = arith.constant 1 : index
    %c0_68 = arith.constant 0 : index
    %c0_69 = arith.constant 0 : index
    %132 = vector.load %arg19[%c1_67, %c0_68, %c0_69] : memref<2x2x32xf32, #tpu.memory_space<vmem>>, vector<1x2x32xf32>
    %133 = vector.shape_cast %132 : vector<1x2x32xf32> to vector<2x32xf32>
    %134 = vector.shape_cast %120 : vector<2x32xf32> to vector<1x2x32xf32>
    tpu.vector_store %arg19[%c1_67, %c0_68, %c0_69], %134 {strides = array<i32>} : memref<2x2x32xf32, #tpu.memory_space<vmem>>, vector<1x2x32xf32>,
    %c1_70 = arith.constant 1 : index
    %c0_71 = arith.constant 0 : index
    %c0_72 = arith.constant 0 : index
    %135 = vector.load %arg20[%c1_70, %c0_71, %c0_72] : memref<2x2x32xf32, #tpu.memory_space<vmem>>, vector<1x2x32xf32>
    %136 = vector.shape_cast %135 : vector<1x2x32xf32> to vector<2x32xf32>
    %137 = vector.shape_cast %118 : vector<2x32xf32> to vector<1x2x32xf32>
    tpu.vector_store %arg20[%c1_70, %c0_71, %c0_72], %137 {strides = array<i32>} : memref<2x2x32xf32, #tpu.memory_space<vmem>>, vector<1x2x32xf32>,
    %c0_73 = arith.constant 0 : index
    %c0_74 = arith.constant 0 : index
    %138 = vector.load %arg18[%c0_73, %c0_74] : memref<2x32xf32, #tpu.memory_space<vmem>>, vector<2x32xf32>
    tpu.vector_store %arg18[%c0_73, %c0_74], %125 {strides = array<i32>} : memref<2x32xf32, #tpu.memory_space<vmem>>, vector<2x32xf32>,
    return
  }
}

</mosaic_0001>

<bundles_post_ra>
// kernel: decoder_pallas.1
= control target key start
LH: loop header
LB: loop body
LE: loop exit
PB: predicated region body
PF: predicated region fallthrough
CT: control target
= control target key end

     0   :  { %s2226_s0 = inlined_call_operand.vmem [shape: f32[2,16], index: 0, kind: input, shape index: {}]   ;;  %s2227_s1 = inlined_call_operand.hbm [shape: f32[2,2,32], index: 1, kind: input, shape index: {}, may-alias: {1,19}]   ;;  %s2228_s2 = inlined_call_operand.hbm [shape: f32[2,2,32], index: 2, kind: input, shape index: {}, may-alias: {2,20}]   ;;  %s2229_s3 = inlined_call_operand.vmem [shape: f32[2,8,32], index: 3, kind: input, shape index: {}]   ;;  %s2230_s4 = inlined_call_operand.vmem [shape: bf16[32,32], index: 4, kind: input, shape index: {}]   ;;  %s2231_s5 = inlined_call_operand.vmem [shape: bf16[32,32], index: 5, kind: input, shape index: {}]   ;;  %s2232_s6 = inlined_call_operand.vmem [shape: f32[1,32], index: 6, kind: input, shape index: {}]   ;;  %s2233_s7 = inlined_call_operand.vmem [shape: bf16[32,1], index: 7, kind: input, shape index: {}]   ;;  %s2234_s8 = inlined_call_operand.hbm [shape: bf16[16,128], index: 8, kind: input, shape index: {}]   ;;  %s2235_s9 = inlined_call_operand.vmem [shape: bf16[32,128], index: 9, kind: input, shape index: {}]   ;;  %s2236_s10 = inlined_call_operand.vmem [shape: bf16[32,128], index: 10, kind: input, shape index: {}]   ;;  %s2237_s11 = inlined_call_operand.vmem [shape: f32[1,128], index: 11, kind: input, shape index: {}]   ;;  %s2238_s12 = inlined_call_operand.vmem [shape: bf16[32,128], index: 12, kind: input, shape index: {}]   ;;  %s2239_s13 = inlined_call_operand.vmem [shape: bf16[32,128], index: 13, kind: input, shape index: {}]   ;;  %s2240_s14 = inlined_call_operand.vmem [shape: f32[1,128], index: 14, kind: input, shape index: {}]   ;;  %s2241_s15 = inlined_call_operand.hbm [shape: bf16[32,32], index: 15, kind: input, shape index: {}]   ;;  %s2242_s16 = inlined_call_operand.hbm [shape: bf16[32,32], index: 16, kind: input, shape index: {}]   ;;  %s2243_s17 = inlined_call_operand.vmem [shape: f32[1,32], index: 17, kind: input, shape index: {}]   ;;  %s2244_s18 = inlined_call_operand.hbm [shape: f32[2,32], index: 18, kind: output, shape index: {0}]   ;;  %s2245_s19 = inlined_call_operand.hbm [shape: f32[2,2,32], index: 19, kind: output, shape index: {1}, may-alias: {1,19}]   ;;  %s2246_s20 = inlined_call_operand.hbm [shape: f32[2,2,32], index: 20, kind: output, shape index: {2}, may-alias: {2,20}]  }
   0x1   :  { %2249 = sst [smem:[#allocation20_spill]] %s2226_s0 }
   0x2   :  { %2250 = sst [smem:[#allocation21_spill]] %s2227_s1 }
   0x3   :  { %2251 = sst [smem:[#allocation22_spill]] %s2228_s2 }
   0x4   :  { %2252 = sst [smem:[#allocation23_spill]] %s2229_s3 }
   0x5   :  { %2253 = sst [smem:[#allocation24_spill]] %s2230_s4 }
   0x6   :  { %26 = vsyncpa [#allocation3], 0 }
   0x7   :  { %27 = vsyncpa [#allocation6], 0 }
   0x8   :  { %28 = vsyncpa [#allocation9], 0 }
   0x9   :  { %29 = vsyncpa [#allocation4], 0 }
   0xa   :  { %30 = vsyncpa [#allocation13], 0  ;;  %s1890_s1 = smov [#allocation5]  }
   0xb   :  { %s50_s22 = sshll.u32 %s1890_s1, 4  ;;  %s51_s22 = int_to_ptr.vmem [resolvable:$true] %s50_s22 }
   0xc   :  { %s1728_s23 = scalar_lea.vmem %s51_s22, 64  ;;  %p1733_p1 = scmp.lt.s32.totalorder %s51_s22, %s51_s22 }
   0xd   :  { %p1729_p0 = scmp.ne.s32.totalorder %s51_s22, %s1728_s23  ;;  %p1734_p2 = scmp.lt.s32.totalorder %s1728_s23, %s1728_s23 }
   0xf   :  { %p1735_p3 = por %p1734_p2, %p1733_p1 }
  0x11   :  { %p1736_p4 = pnand %p1735_p3, %p1729_p0 }
  0x13   :  { %1739 = shalt.err (!%p1736_p4)
}
  0x14   :  { %s1891_s24 = smov 32   ;;  %s1892_s2 = smov 2  }
  0x15   :  { %s2254_s26 = sld [smem:[#allocation22_spill]]  ;;  %s1893_s27 = smov [#allocation8]  }
  0x16   :  { %s96_s28 = sshll.u32 %s1893_s27, 4  ;;  %s1894_s4 = smov [#allocation2]   ;;  %s97_s28 = int_to_ptr.vmem [resolvable:$true] %s96_s28 }
  0x17   :  { %s38_s29 = sshll.u32 %s1894_s4, 4  ;;  %s1748_s30 = scalar_lea.vmem %s97_s28, 256  ;;  %s39_s29 = int_to_ptr.vmem [resolvable:$true] %s38_s29 }
  0x18   :  { %p1749_p5 = scmp.ne.s32.totalorder %s97_s28, %s1748_s30  ;;  %p1753_p6 = scmp.lt.s32.totalorder %s97_s28, %s97_s28 }
  0x19   :  { %p1754_p7 = scmp.lt.s32.totalorder %s1748_s30, %s1748_s30 }
  0x1b   :  { %56 = dma.hbm_to_vmem [thread:$0]  %s2254_s26, 64, %s51_s22, [#allocation6], %s1891_s24, %s1891_s24, %s1892_s2  }
  0x1c   :  { %p1755_p8 = por %p1754_p7, %p1753_p6 }
  0x1e   :  { %p1756_p9 = pnand %p1755_p8, %p1749_p5 }
  0x20   :  { %1759 = shalt.err (!%p1756_p9)
}
  0x21   :  { %s1895_s0 = smov 64   ;;  %s1896_s21 = smov 4  }
  0x22   :  { %102 = dma.hbm_to_vmem [thread:$0]  %s2241_s15, 256, %s97_s28, [#allocation9], %s1895_s0, %s1895_s0, %s1896_s21  }
  0x23   :  { %s1768_s22 = scalar_lea.vmem %s39_s29, 64  ;;  %p1773_p11 = scmp.lt.s32.totalorder %s39_s29, %s39_s29 }
  0x24   :  { %p1769_p10 = scmp.ne.s32.totalorder %s39_s29, %s1768_s22  ;;  %p1774_p12 = scmp.lt.s32.totalorder %s1768_s22, %s1768_s22 }
  0x26   :  { %p1775_p13 = por %p1774_p12, %p1773_p11 }
  0x28   :  { %p1776_p0 = pnand %p1775_p13, %p1769_p10 }
  0x2a   :  { %1779 = shalt.err (!%p1776_p0)
}
  0x2b   :  { %s2255_s26 = sld [smem:[#allocation21_spill]]  ;;  %s1897_s27 = smov [#allocation7]  }
  0x2c   :  { %s72_s4 = sshll.u32 %s1897_s27, 4  ;;  %s1898_s30 = smov [#allocation10]   ;;  %s73_s4 = int_to_ptr.vmem [resolvable:$true] %s72_s4 }
  0x2d   :  { %s108_s15 = sshll.u32 %s1898_s30, 4  ;;  %s1788_s28 = scalar_lea.vmem %s73_s4, 128  ;;  %s109_s15 = int_to_ptr.vmem [resolvable:$true] %s108_s15 }
  0x2e   :  { %p1789_p1 = scmp.ne.s32.totalorder %s73_s4, %s1788_s28  ;;  %p1793_p2 = scmp.lt.s32.totalorder %s73_s4, %s73_s4 }
  0x2f   :  { %p1794_p3 = scmp.lt.s32.totalorder %s1788_s28, %s1788_s28 }
  0x31   :  { %44 = dma.hbm_to_vmem [thread:$0]  %s2255_s26, 64, %s39_s29, [#allocation3], %s1891_s24, %s1891_s24, %s1892_s2  }
  0x32   :  { %p1795_p4 = por %p1794_p3, %p1793_p2 }
  0x34   :  { %p1796_p5 = pnand %p1795_p4, %p1789_p1 }
  0x36   :  { %1799 = shalt.err (!%p1796_p5)
}
  0x37   :  { %78 = dma.hbm_to_vmem [thread:$0]  %s2234_s8, 128, %s73_s4, [#allocation6], %s1895_s0, %s1895_s0, %s1896_s21  }
  0x38   :  { %s1808_s29 = scalar_lea.vmem %s109_s15, 256  ;;  %p1813_p7 = scmp.lt.s32.totalorder %s109_s15, %s109_s15 }
  0x39   :  { %p1809_p6 = scmp.ne.s32.totalorder %s109_s15, %s1808_s29  ;;  %p1814_p8 = scmp.lt.s32.totalorder %s1808_s29, %s1808_s29 }
  0x3b   :  { %p1815_p9 = por %p1814_p8, %p1813_p7 }
  0x3d   :  { %p1816_p10 = pnand %p1815_p9, %p1809_p6 }
  0x3f   :  { %1819 = shalt.err (!%p1816_p10)
}
  0x40   :  { %114 = dma.hbm_to_vmem [thread:$0]  %s2242_s16, 256, %s109_s15, [#allocation9], %s1895_s0, %s1895_s0, %s1896_s21  }
  0x41   :  { %1880 = dma.done.wait [#allocation3], 64  }
  0x42   :  { %1881 = vsyncadd [#allocation3], 4294967232 }
  0x43   :  { %1882 = dma.done.wait [#allocation6], 192  }
  0x44   :  { %1883 = vsyncadd [#allocation6], 4294967104 }
  0x45   :  { %1884 = dma.done.wait [#allocation9], 512  }
  0x46   :  { %1885 = vsyncadd [#allocation9], 4294966784  ;;  %v1899_v0 = vmov 0.0   ;;  %vm1900_vm0 = vmmov 0   ;;  %s2256_s26 = sld [smem:[#allocation24_spill]]  ;;  %v1495_v3 = vld [vmem:[%s2231_s5 + $0x8] sm:$0xff]   ;;  %v386_v24 = vlaneseq }
  0x47   :  { %1557 = vmatprep.subr.mxu0 %v1899_v0  ;;  %1565 = vmatprep.mubr.msk.f32.mxu0 %vm1900_vm0, %v1899_v0  ;;  %vm227_vm1 = vcmask 261120   ;;  %v1427_v6 = vld [vmem:[%s2231_s5] sm:$0xff]   ;;  %s2257_s23 = sld [smem:[#allocation23_spill]]  ;;  %v1432_v8 = vunpack.c.l.bf16 %v1495_v3  ;;  %v1433_v9 = vunpack.c.h.bf16 %v1495_v3  ;;  %v1496_v16 = vld [vmem:[%s2233_s7 + $0x8] sm:$0xff]   ;;  %v1901_v22 = vmov 1966171168  }
  0x48   :  { %v1429_v11 = vunpack.c.h.bf16 %v1427_v6  ;;  %v1428_v13 = vunpack.c.l.bf16 %v1427_v6  ;;  %v2063_v14 = vld [vmem:[#allocation2 + $0x2] sm:$0x3]  ;;  %v1441_v18 = vunpack.c.h.bf16 %v1496_v16  ;;  %v1440_v19 = vunpack.c.l.bf16 %v1496_v16  ;;  %v1398_v27 = vld [vmem:[%s2232_s6] ss:$0 sm:$0xff]  ;;  %s2258_s15 = sld [smem:[#allocation20_spill]] }
  0x49   :  { %1568 = vmatprep.subr.mxu1 %v1433_v9  ;;  %v1435_v17 = vld [vmem:[%s2233_s7] sm:$0xff]   ;;  %v384_v23 = vunpack.c.l.s4 %v1901_v22  ;;  %v2086_v26 = vshrl.u32 %v386_v24, 7  ;;  %v1902_v45 = vmov 0   ;;  %v509_v48 = vand.u32 127, %v386_v24 }
  0x4a   :  { %1569 = vmatpush3.msra.mxu1 %v1433_v9  ;;  %v1437_v20 = vunpack.c.h.bf16 %v1435_v17  ;;  %v1436_v21 = vunpack.c.l.bf16 %v1435_v17  ;;  %1690 = vset.pattern.permute.xlu0 %v1902_v45  ;;  %vm518_vm2 = vcmask 1041409   ;;  %vm521_vm3 = vcmask 58368  }
  0x4b   :  { %1570 = vmatprep.subr.mxu1 %v1432_v8  ;;  %v385_v25 = vunpack.c.0.s8 %v384_v23  ;;  %v407_v34 = vsub.s32 0, %v2086_v26  ;;  %1691 = vset.pattern.permute.xlu1 %v1902_v45  ;;  %v512_v50 = vsub.s32 %v509_v48, %v2086_v26  ;;  %v532_v56 = vsub.s32 1, %v2086_v26  ;;  %v1407_v48 = vld [vmem:[%s2237_s11] ss:$0 sm:$0xff] }
  0x4c   :  { %v1494_v1 = vld [vmem:[%s2256_s26 + $0x8] sm:$0xff]   ;;  %v1419_v2 = vld [vmem:[%s2256_s26] sm:$0xff]   ;;  %1571 = vmatpush3.msra.mxu1 %v1432_v8  ;;  %vm586_vm4 = vcmask 64512   ;;  %vm739_vm5 = vcmask 130048   ;;  %vm1333_vm6 = vcmask 254976  }
  0x4d   :  { %v1424_v4 = vunpack.c.l.bf16 %v1494_v1  ;;  %v1425_v5 = vunpack.c.h.bf16 %v1494_v1  ;;  %v213_v7 = vld [vmem:[%s2257_s23] sm:$0xff]  ;;  %v1421_v10 = vunpack.c.h.bf16 %v1419_v2  ;;  %v1420_v12 = vunpack.c.l.bf16 %v1419_v2  ;;  %1572 = vmatprep.subr.mxu1 %v1429_v11  ;;  %v2069_v15 = vld [vmem:[%s2257_s23 + $0x8] sm:$0xff] }
  0x4e   :  { %1576 = vmatprep.mubr.msk.f32.mxu1 %vm227_vm1, %v213_v7  ;;  %1573 = vmatpush3.msra.mxu1 %v1429_v11  ;;  %v388_v28 = vsub.s32 %v385_v25, %v2086_v26  ;;  %v1497_v25 = vld [vmem:[%s2235_s9 + $0x8] sm:$0xff]  }
  0x4f   :  { %1558 = vmatpush3.msra.mxu0 %v1425_v5  ;;  %1574 = vmatprep.subr.mxu1 %v1428_v13  ;;  %v1498_v26 = vld [vmem:[%s2236_s10 + $0x8] sm:$0xff]  }
  0x50   :  { %1559 = vmatprep.subr.mxu0 %v1899_v0  ;;  %1575 = vmatpush3.msra.mxu1 %v1428_v13 }
  0x51   :  { %1560 = vmatpush3.msra.mxu0 %v1424_v4  ;;  %1577 = vmatmul.mubr.msk.f32.vlgmr.msra.gmra.mxu1 %vm227_vm1, %v2069_v15 }
  0x52   :  { %1561 = vmatprep.subr.mxu0 %v1899_v0  ;;  %1590 = vmatprep.subr.mxu1 %v1899_v0 }
  0x53   :  { %1562 = vmatpush3.msra.mxu0 %v1421_v10  ;;  %1591 = vmatpush3.msra.mxu1 %v213_v7 }
  0x54   :  { %1563 = vmatprep.subr.mxu0 %v1899_v0  ;;  %1592 = vmatprep.mubr.msk.f32.mxu1 %vm1900_vm0, %v1899_v0 }
  0x55   :  { %1564 = vmatpush3.msra.mxu0 %v1420_v12  ;;  %1595 = vmatprep.subr.mxu1 %v1899_v0 }
  0x56   :  { %1566 = vmatmul.mubr.msk.f32.vlgmr.msra.gmra.mxu0 %vm227_vm1, %v2063_v14  ;;  %1579 = vmatprep.subr.mxu0 %v1441_v18 }
  0x57   :  { %1580 = vmatpush3.msra.mxu0 %v1441_v18  ;;  %v1443_v18 = vld [vmem:[#allocation7] sm:$0xff]  }
  0x58   :  { %1581 = vmatprep.subr.mxu0 %v1440_v19 }
  0x59   :  { %1582 = vmatpush3.msra.mxu0 %v1440_v19  ;;  %v1445_v19 = vunpack.c.h.bf16 %v1443_v18 }
  0x5a   :  { %1583 = vmatprep.subr.mxu0 %v1437_v20 }
  0x5b   :  { %1584 = vmatpush3.msra.mxu0 %v1437_v20  ;;  %v1444_v20 = vunpack.c.l.bf16 %v1443_v18 }
  0x5c   :  { %1585 = vmatprep.subr.mxu0 %v1436_v21 }
  0x5d   :  { %1586 = vmatpush3.msra.mxu0 %v1436_v21 }
  0x5e   :  { %1600 = vmatprep.subr.mxu0 %v1899_v0 }
 0x111   :  { %v1578_v32 = vpop.f32.mrf.mxu1 }
 0x113   :  { %v373_v37 = vpop.f32.mrf.mxu1 }
 0x116   :  { %v297_v29 = vpop.f32.mrf.mxu0 }
 0x117   :  { %v298_v30 = vadd.f32 %v1398_v27, %v297_v29  ;;  %v1453_v27 = vunpack.c.h.bf16 %v1497_v25  ;;  %v1452_v29 = vunpack.c.l.bf16 %v1497_v25 }
 0x118   :  { %v1567_v31 = vpop.f32.mrf.mxu0 }
 0x119   :  { %v389_v33 = vrot.slane %v298_v30, %v388_v28  ;;  %v1460_v30 = vunpack.c.l.bf16 %v1498_v26  ;;  %v1447_v31 = vld [vmem:[%s2235_s9] sm:$0xff]  }
 0x11b   :  { %v390_v35 = vcombine.high %v389_v33, %v389_v33  ;;  %v397_v36 = vrot.slane %v389_v33, %v388_v28  ;;  %v1449_v33 = vunpack.c.h.bf16 %v1447_v31 }
 0x11d   :  { %v404_v38 = vrot.slane %v390_v35, %v388_v28  ;;  %v408_v39 = vrot.slane %v397_v36, %v407_v34  ;;  %v1461_v28 = vunpack.c.h.bf16 %v1498_v26  ;;  %v1448_v35 = vunpack.c.l.bf16 %v1447_v31 }
 0x11f   :  { %v412_v40 = vrot.slane %v404_v38, %v407_v34  ;;  %v415_v41 = vadd.f32 %v408_v39, %v373_v37  ;;  %v215_v37 = vld [vmem:[#allocation2] sm:$0x3] }
 0x121   :  { %v416_v42 = vadd.f32 %v1578_v32, %v412_v40  ;;  %1692 = vtanh.f32 %v415_v41  ;;  %v1455_v32 = vld [vmem:[%s2236_s10] sm:$0xff]  }
 0x122   :  { %v1456_v36 = vunpack.c.l.bf16 %v1455_v32 }
 0x123   :  { %1694 = vtanh.f32 %v416_v42 }
 0x12e   :  { %v1693_v43 = vpop.eup %1692 }
 0x12f   :  { %1587 = vmatprep.mubr.msk.f32.mxu0 %vm227_vm1, %v1693_v43 }
 0x130   :  { %v1695_v44 = vpop.eup %1694 }
 0x131   :  { %1588 = vmatmul.mubr.msk.f32.vlgmr.msra.gmra.mxu0 %vm227_vm1, %v1695_v44 }
 0x132   :  { %1604 = vmatprep.mubr.msk.f32.mxu0 %vm1900_vm0, %v1899_v0  ;;  %1601 = vmatpush3.msra.mxu0 %v1445_v19 }
 0x133   :  { %1602 = vmatprep.subr.mxu0 %v1899_v0 }
 0x134   :  { %1603 = vmatpush3.msra.mxu0 %v1444_v20  ;;  %v1502_v20 = vld [vmem:[#allocation10 + $0x8] sm:$0xff]  }
 0x135   :  { %1618 = vmatprep.subr.mxu0 %v1899_v0 }
 0x1f1   :  { %v1589_v46 = vpop.f32.mrf.mxu0 }
 0x1f3   :  { %v491_v47 = vpop.f32.mrf.mxu0 }
 0x1f4   :  { %503 = vperm.xlu0 %1690, %v491_v47  }
 0x1f8   :  { %506 = vperm.xlu0 %1690, %v1589_v46  }
 0x26f   :  { %v504_v49 = vpop.permute.xlu0 %503 }
 0x270   :  { %v513_v52 = vrot.slane %v504_v49, %v512_v50 }
 0x273   :  { %v507_v51 = vpop.permute.xlu0 %506 }
 0x274   :  { %v517_v53 = vrot.slane %v507_v51, %v512_v50 }
 0x276   :  { %v519_v54 = vsel %vm518_vm2, %v517_v53, %v513_v52 }
 0x277   :  { %v522_v55 = vsel %vm521_vm3, %v519_v54, -inf }
 0x278   :  { %523 = vmax.xlane.f32.xlu1 %v522_v55  ;;  %v218_v55 = vld [vmem:[#allocation5] sm:$0x3] }
 0x301   :  { %v524_v57 = vpop.xlane.xlu1 %523 }
 0x302   :  { %v529_v58 = vrot.slane %v524_v57, %v407_v34  ;;  %v533_v59 = vrot.slane %v524_v57, %v532_v56 }
 0x304   :  { %v536_v60 = vsub.f32 %v491_v47, %v529_v58  ;;  %v537_v61 = vsub.f32 %v1589_v46, %v533_v59 }
 0x306   :  { %v538_v62 = vmul.f32 1.442695, %v536_v60  ;;  %v540_v63 = vmul.f32 1.442695, %v537_v61 }
 0x308   :  { %1696 = vpow2.f32 %v538_v62 }
 0x309   :  { %1698 = vpow2.f32 %v540_v63 }
 0x315   :  { %v1697_v1 = vpop.eup %1696 }
 0x316   :  { %v1699_v2 = vpop.eup %1698  ;;  %545 = vperm.xlu1 %1691, %v1697_v1  }
 0x317   :  { %548 = vperm.xlu0 %1690, %v1699_v2  }
 0x391   :  { %v546_v3 = vpop.permute.xlu1 %545 }
 0x392   :  { %v549_v4 = vpop.permute.xlu0 %548  ;;  %v553_v5 = vrot.slane %v546_v3, %v512_v50  ;;  %v1499_v3 = vld [vmem:[%s2238_s12 + $0x8] sm:$0xff]  }
 0x393   :  { %v557_v6 = vrot.slane %v549_v4, %v512_v50  ;;  %v1500_v4 = vld [vmem:[%s2239_s13 + $0x8] sm:$0xff]  }
 0x395   :  { %v558_v7 = vsel %vm518_vm2, %v557_v6, %v553_v5  ;;  %v1463_v5 = vld [vmem:[%s2238_s12] sm:$0xff]   ;;  %v1469_v6 = vunpack.c.h.bf16 %v1499_v3  ;;  %s1903_s12 = smov 96  }
 0x396   :  { %v560_v8 = vsel %vm521_vm3, %v558_v7, 0.0  ;;  %v1477_v7 = vunpack.c.h.bf16 %v1500_v4 }
 0x397   :  { %561 = vadd.xlane.f32.xlu0 %v560_v8  ;;  %v1468_v8 = vunpack.c.l.bf16 %v1499_v3 }
 0x420   :  { %v562_v9 = vpop.xlane.xlu0 %561 }
 0x421   :  { %v567_v10 = vrot.slane %v562_v9, %v407_v34  ;;  %v571_v11 = vrot.slane %v562_v9, %v532_v56  ;;  %v1457_v34 = vunpack.c.h.bf16 %v1455_v32  ;;  %v1476_v9 = vunpack.c.l.bf16 %v1500_v4 }
 0x423   :  { %1700 = vrcp.f32 %v567_v10  ;;  %v1471_v10 = vld [vmem:[%s2239_s13] sm:$0xff]  }
 0x424   :  { %1702 = vrcp.f32 %v571_v11  ;;  %v1465_v11 = vunpack.c.h.bf16 %v1463_v5 }
 0x430   :  { %v1701_v12 = vpop.eup %1700 }
 0x431   :  { %v575_v13 = vmul.f32 %v1701_v12, %v1697_v1  ;;  %v1703_v16 = vpop.eup %1702  ;;  %v1473_v12 = vunpack.c.h.bf16 %v1471_v10 }
 0x432   :  { %v577_v17 = vmul.f32 %v1703_v16, %v1699_v2 }
 0x433   :  { %580 = vperm.xlu1 %1691, %v575_v13   ;;  %v1464_v13 = vunpack.c.l.bf16 %v1463_v5 }
 0x437   :  { %661 = vperm.xlu1 %1691, %v577_v17   ;;  %v1472_v17 = vunpack.c.l.bf16 %v1471_v10 }
 0x4ae   :  { %v581_v21 = vpop.permute.xlu1 %580 }
 0x4af   :  { %v585_v22 = vrot.slane %v581_v21, %v512_v50  ;;  %v1493_v21 = vunpack.c.h.bf16 %v1502_v20 }
 0x4b1   :  { %1593 = vmatmul.mubr.msk.f32.vlgmr.msra.gmra.mxu1 %vm586_vm4, %v585_v22  ;;  %v1487_v22 = vld [vmem:[#allocation10] sm:$0xff]  }
 0x4b2   :  { %1596 = vmatpush3.msra.mxu1 %v2069_v15  ;;  %v662_v23 = vpop.permute.xlu1 %661  ;;  %1597 = vmatprep.mubr.msk.f32.mxu1 %vm1900_vm0, %v1899_v0  ;;  %v212_v15 = vld [vmem:[%s2258_s15] sm:$0x3]  ;;  %v1488_v26 = vunpack.c.l.bf16 %v1487_v22 }
 0x4b3   :  { %v666_v24 = vrot.slane %v662_v23, %v512_v50  ;;  %1607 = vmatprep.subr.mxu1 %v1899_v0  ;;  %1605 = vmatmul.mubr.msk.f32.vlgmr.msra.gmra.mxu0 %vm739_vm5, %v212_v15 }
 0x4b4   :  { %1619 = vmatpush3.msra.mxu0 %v1461_v28  ;;  %1626 = vmatprep.mubr.msk.f32.mxu0 %vm1900_vm0, %v1899_v0  ;;  %v1412_v28 = vld [vmem:[%s2240_s14] ss:$0 sm:$0xff]  ;;  %s1904_s14 = smov [#allocation12]  }
 0x4b5   :  { %1598 = vmatmul.mubr.msk.f32.vlgmr.msra.gmra.mxu1 %vm586_vm4, %v666_v24  ;;  %1620 = vmatprep.subr.mxu0 %v1899_v0  ;;  %v1492_v24 = vunpack.c.l.bf16 %v1502_v20 }
 0x4b6   :  { %1615 = vmatprep.mubr.msk.f32.mxu1 %vm1900_vm0, %v1899_v0  ;;  %1608 = vmatpush3.msra.mxu1 %v1453_v27 }
 0x4b7   :  { %1609 = vmatprep.subr.mxu1 %v1899_v0  ;;  %1621 = vmatpush3.msra.mxu0 %v1460_v30 }
 0x4b8   :  { %1610 = vmatpush3.msra.mxu1 %v1452_v29  ;;  %1622 = vmatprep.subr.mxu0 %v1899_v0 }
 0x4b9   :  { %1611 = vmatprep.subr.mxu1 %v1899_v0  ;;  %1623 = vmatpush3.msra.mxu0 %v1457_v34 }
 0x4ba   :  { %1612 = vmatpush3.msra.mxu1 %v1449_v33  ;;  %1624 = vmatprep.subr.mxu0 %v1899_v0 }
 0x4bb   :  { %1613 = vmatprep.subr.mxu1 %v1899_v0  ;;  %1625 = vmatpush3.msra.mxu0 %v1456_v36  ;;  %v220_v36 = vld [vmem:[#allocation5 + $0x2] sm:$0x3] }
 0x4bc   :  { %1614 = vmatpush3.msra.mxu1 %v1448_v35  ;;  %1627 = vmatmul.mubr.msk.f32.vlgmr.msra.gmra.mxu0 %vm227_vm1, %v215_v37 }
 0x4bd   :  { %1629 = vmatprep.subr.mxu1 %v1899_v0  ;;  %1640 = vmatprep.subr.mxu0 %v1899_v0 }
 0x4be   :  { %1648 = vmatprep.mubr.msk.f32.mxu0 %vm1900_vm0, %v1899_v0  ;;  %1641 = vmatpush3.msra.mxu0 %v1477_v7 }
 0x4bf   :  { %1642 = vmatprep.subr.mxu0 %v1899_v0 }
 0x4c0   :  { %1643 = vmatpush3.msra.mxu0 %v1476_v9 }
 0x4c1   :  { %1644 = vmatprep.subr.mxu0 %v1899_v0 }
 0x4c2   :  { %1645 = vmatpush3.msra.mxu0 %v1473_v12 }
 0x4c3   :  { %1646 = vmatprep.subr.mxu0 %v1899_v0 }
 0x4c4   :  { %1647 = vmatpush3.msra.mxu0 %v1472_v17 }
 0x4c5   :  { %1649 = vmatmul.mubr.msk.f32.vlgmr.msra.gmra.mxu0 %vm227_vm1, %v2063_v14  ;;  %1662 = vmatprep.subr.mxu0 %v1899_v0  ;;  %v1489_v14 = vunpack.c.h.bf16 %v1487_v22 }
 0x4c6   :  { %1670 = vmatprep.mubr.msk.f32.mxu0 %vm1900_vm0, %v1899_v0 }
 0x571   :  { %v655_v38 = vpop.f32.mrf.mxu1 }
 0x573   :  { %v1594_v39 = vpop.f32.mrf.mxu1  ;;  %v809_v44 = vpop.f32.mrf.mxu0 }
 0x574   :  { %v819_v49 = vadd.f32 %v1407_v48, %v809_v44  ;;  %v1479_v48 = vld [vmem:[#allocation8] sm:$0xff]  }
 0x575   :  { %v735_v40 = vpop.f32.mrf.mxu1  ;;  %v1606_v45 = vpop.f32.mrf.mxu0 }
 0x576   :  { %v822_v41 = vrot.slane %v735_v40, 7 }
 0x577   :  { %v1599_v42 = vpop.f32.mrf.mxu1 }
 0x578   :  { %v2140_v43 = vsel %vm518_vm2, %v822_v41, %v655_v38 }
 0x579   :  { %1616 = vmatmul.mubr.msk.f32.vlgmr.msra.gmra.mxu1 %vm227_vm1, %v2140_v43 }
 0x57a   :  { %1637 = vmatprep.mubr.msk.f32.mxu1 %vm1900_vm0, %v1899_v0  ;;  %1630 = vmatpush3.msra.mxu1 %v1469_v6 }
 0x57b   :  { %1631 = vmatprep.subr.mxu1 %v1899_v0 }
 0x57c   :  { %v966_v46 = vpop.f32.mrf.mxu0  ;;  %1632 = vmatpush3.msra.mxu1 %v1468_v8 }
 0x57d   :  { %1633 = vmatprep.subr.mxu1 %v1899_v0 }
 0x57e   :  { %v1628_v47 = vpop.f32.mrf.mxu0  ;;  %1634 = vmatpush3.msra.mxu1 %v1465_v11 }
 0x57f   :  { %1635 = vmatprep.subr.mxu1 %v1899_v0  ;;  %v1501_v47 = vld [vmem:[#allocation8 + $0x8] sm:$0xff]  }
 0x580   :  { %1636 = vmatpush3.msra.mxu1 %v1464_v13 }
 0x581   :  { %1651 = vmatprep.subr.mxu1 %v1899_v0 }
 0x585   :  { %v1147_v15 = vpop.f32.mrf.mxu0 }
 0x587   :  { %v1650_v27 = vpop.f32.mrf.mxu0 }
 0x639   :  { %v892_v50 = vpop.f32.mrf.mxu1 }
 0x63a   :  { %v896_v51 = vadd.f32 %v892_v50, %v819_v49  ;;  %v1485_v49 = vunpack.c.h.bf16 %v1501_v47  ;;  %v1484_v50 = vunpack.c.l.bf16 %v1501_v47 }
 0x63b   :  { %v1617_v52 = vpop.f32.mrf.mxu1 }
 0x63c   :  { %v970_v53 = vadd.f32 %v966_v46, %v896_v51  ;;  %1663 = vmatpush3.msra.mxu0 %v1485_v49  ;;  %v1481_v51 = vunpack.c.h.bf16 %v1479_v48  ;;  %v1480_v52 = vunpack.c.l.bf16 %v1479_v48 }
 0x63d   :  { %1664 = vmatprep.subr.mxu0 %v1899_v0 }
 0x63e   :  { %1704 = vtanh.f32 %v970_v53  ;;  %v1410_v56 = vmul.f32 -1.442695, %v970_v53  ;;  %1665 = vmatpush3.msra.mxu0 %v1484_v50 }
 0x63f   :  { %1666 = vmatprep.subr.mxu0 %v1899_v0 }
 0x640   :  { %1706 = vpow2.f32 %v1410_v56  ;;  %1667 = vmatpush3.msra.mxu0 %v1481_v51 }
 0x641   :  { %1668 = vmatprep.subr.mxu0 %v1899_v0 }
 0x642   :  { %1669 = vmatpush3.msra.mxu0 %v1480_v52 }
 0x64b   :  { %v1705_v54 = vpop.eup %1704 }
 0x64c   :  { %984 = vrot.lane.b32.xlu1 %v1705_v54, %s1895_s0 }
 0x64d   :  { %v1707_v57 = vpop.eup %1706 }
 0x64e   :  { %v974_v58 = vadd.f32 1.0, %v1707_v57 }
 0x650   :  { %979 = vrot.lane.b32.xlu1 %v218_v55, %s1891_s24  ;;  %1708 = vrcp.f32 %v974_v58 }
 0x65d   :  { %v1709_v59 = vpop.eup %1708 }
 0x6be   :  { %v985_v60 = vpop.permute.xlu1 %984 }
 0x6bf   :  { %v987_v61 = vmul.f32 %v1709_v59, %v985_v60 }
 0x6c1   :  { %989 = vrot.lane.b32.xlu1 %v987_v61, %s1891_s24 }
 0x6c2   :  { %v980_v62 = vpop.permute.xlu1 %979 }
 0x6c3   :  { %v982_v63 = vmul.f32 %v1709_v59, %v980_v62 }
 0x733   :  { %v990_v1 = vpop.permute.xlu1 %989 }
 0x734   :  { %v992_v2 = vadd.f32 %v990_v1, %v982_v63 }
 0x736   :  { %1710 = vtanh.f32 %v992_v2 }
 0x743   :  { %v1711_v16 = vpop.eup %1710 }
 0x744   :  { %995 = vrot.lane.b32.xlu1 %v1711_v16, %s1895_s0 }
 0x7b6   :  { %v996_v18 = vpop.permute.xlu1 %995 }
 0x7b7   :  { %v998_v19 = vmul.f32 %v1709_v59, %v996_v18 }
 0x7b9   :  { %1000 = vrot.lane.b32.xlu0 %v998_v19, %s1891_s24 }
 0x7bd   :  { %1336 = vrot.lane.b32.xlu0 %v992_v2, %s1903_s12 }
 0x82b   :  { %v1001_v23 = vpop.permute.xlu0 %1000 }
 0x82c   :  { %1334 = vst.msk [vmem:[#allocation12] sm:$0x3] %vm1333_vm6, %v1001_v23  ;;  %1638 = vmatmul.mubr.msk.f32.vlgmr.msra.gmra.mxu1 %vm227_vm1, %v1001_v23 }
 0x82d   :  { %1652 = vmatpush3.msra.mxu1 %v1493_v21  ;;  %1659 = vmatprep.mubr.msk.f32.mxu1 %vm1900_vm0, %v1899_v0 }
 0x82e   :  { %1653 = vmatprep.subr.mxu1 %v1899_v0 }
 0x82f   :  { %1654 = vmatpush3.msra.mxu1 %v1492_v24  ;;  %v1337_v25 = vpop.permute.xlu0 %1336 }
 0x830   :  { %1655 = vmatprep.subr.mxu1 %v1899_v0  ;;  %1339 = vst.msk [vmem:[#allocation14] sm:$0x3] %vm1333_vm6, %v1337_v25 }
 0x831   :  { %1656 = vmatpush3.msra.mxu1 %v1489_v14 }
 0x832   :  { %1657 = vmatprep.subr.mxu1 %v1899_v0 }
 0x833   :  { %1658 = vmatpush3.msra.mxu1 %v1488_v26 }
 0x834   :  { %1660 = vmatmul.mubr.msk.f32.vlgmr.msra.gmra.mxu1 %vm227_vm1, %v2140_v43 }
 0x8ec   :  { %v1070_v29 = vpop.f32.mrf.mxu1 }
 0x8ed   :  { %v1080_v30 = vadd.f32 %v1412_v28, %v1070_v29 }
 0x8ee   :  { %v1639_v31 = vpop.f32.mrf.mxu1 }
 0x8ef   :  { %v1151_v32 = vadd.f32 %v1147_v15, %v1080_v30 }
 0x8f1   :  { %1712 = vtanh.f32 %v1151_v32  ;;  %v1414_v37 = vmul.f32 -1.442695, %v1151_v32 }
 0x8f3   :  { %1714 = vpow2.f32 %v1414_v37 }
 0x8f4   :  { %v2192_v33 = vpop.f32.mrf.mxu1 }
 0x8f6   :  { %v1661_v34 = vpop.f32.mrf.mxu1 }
 0x8fe   :  { %v1713_v35 = vpop.eup %1712 }
 0x8ff   :  { %1165 = vrot.lane.b32.xlu1 %v1713_v35, %s1895_s0 }
 0x900   :  { %v1715_v38 = vpop.eup %1714 }
 0x901   :  { %v1155_v39 = vadd.f32 1.0, %v1715_v38 }
 0x903   :  { %1160 = vrot.lane.b32.xlu1 %v220_v36, %s1891_s24  ;;  %1716 = vrcp.f32 %v1155_v39 }
 0x910   :  { %v1717_v40 = vpop.eup %1716 }
 0x971   :  { %v1166_v41 = vpop.permute.xlu1 %1165 }
 0x972   :  { %v1168_v42 = vmul.f32 %v1717_v40, %v1166_v41 }
 0x974   :  { %1170 = vrot.lane.b32.xlu1 %v1168_v42, %s1891_s24 }
 0x975   :  { %v1161_v43 = vpop.permute.xlu1 %1160 }
 0x976   :  { %v1163_v44 = vmul.f32 %v1717_v40, %v1161_v43 }
 0x9e6   :  { %v1171_v45 = vpop.permute.xlu1 %1170 }
 0x9e7   :  { %v1173_v46 = vadd.f32 %v1171_v45, %v1163_v44 }
 0x9e9   :  { %1718 = vtanh.f32 %v1173_v46 }
 0x9f6   :  { %v1719_v53 = vpop.eup %1718 }
 0x9f7   :  { %1176 = vrot.lane.b32.xlu1 %v1719_v53, %s1895_s0  ;;  %s1365_s0 = sshll.u32 %s1904_s14, 4  ;;  %s1366_s0 = int_to_ptr.vmem [resolvable:$true] %s1365_s0 }
 0x9f8   :  { %s1820_s27 = scalar_lea.vmem %s1366_s0, 64  ;;  %p1825_p12 = scmp.lt.s32.totalorder %s1366_s0, %s1366_s0 }
 0x9f9   :  { %p1821_p11 = scmp.ne.s32.totalorder %s1366_s0, %s1820_s27  ;;  %p1826_p13 = scmp.lt.s32.totalorder %s1820_s27, %s1820_s27 }
 0x9fb   :  { %p1827_p0 = por %p1826_p13, %p1825_p12 }
 0x9fd   :  { %p1828_p1 = pnand %p1827_p0, %p1821_p11 }
 0xa69   :  { %v1177_v54 = vpop.permute.xlu1 %1176 }
 0xa6a   :  { %v1179_v55 = vmul.f32 %v1717_v40, %v1177_v54 }
 0xa6c   :  { %1251 = vrot.lane.b32.xlu1 %v1179_v55, %s1891_s24 }
 0xa70   :  { %1344 = vrot.lane.b32.xlu1 %v1173_v46, %s1903_s12 }
 0xade   :  { %v1252_v56 = vpop.permute.xlu1 %1251 }
 0xadf   :  { %1342 = vst.msk [vmem:[#allocation12 + $0x2] sm:$0x3] %vm1333_vm6, %v1252_v56  ;;  %1671 = vmatmul.mubr.msk.f32.vlgmr.msra.gmra.mxu0 %vm227_vm1, %v1252_v56 }
 0xae2   :  { %v1345_v57 = vpop.permute.xlu1 %1344 }
 0xae3   :  { %1348 = vst.msk [vmem:[#allocation14 + $0x2] sm:$0x3] %vm1333_vm6, %v1345_v57 }
 0xae4   :  { %1831 = shalt.err (!%p1828_p1)
}
 0xae5   :  { %1371 = dma.vmem_to_hbm [thread:$0]  %s1366_s0, 64, %s2245_s19, [#allocation13], %s1891_s24, %s1891_s24, %s1892_s2  }
 0xae6   :  { %s1905_s21 = smov [#allocation14]  }
 0xae7   :  { %s1377_s30 = sshll.u32 %s1905_s21, 4  ;;  %s1378_s30 = int_to_ptr.vmem [resolvable:$true] %s1377_s30 }
 0xae8   :  { %s1840_s15 = scalar_lea.vmem %s1378_s30, 64  ;;  %p1845_p3 = scmp.lt.s32.totalorder %s1378_s30, %s1378_s30 }
 0xae9   :  { %p1841_p2 = scmp.ne.s32.totalorder %s1378_s30, %s1840_s15  ;;  %p1846_p4 = scmp.lt.s32.totalorder %s1840_s15, %s1840_s15 }
 0xaeb   :  { %p1847_p5 = por %p1846_p4, %p1845_p3 }
 0xaed   :  { %p1848_p6 = pnand %p1847_p5, %p1841_p2 }
 0xaef   :  { %1851 = shalt.err (!%p1848_p6)
}
 0xaf0   :  { %1383 = dma.vmem_to_hbm [thread:$0]  %s1378_s30, 64, %s2246_s20, [#allocation13], %s1891_s24, %s1891_s24, %s1892_s2  }
 0xaf1   :  { %v1417_v0 = vld [vmem:[%s2243_s17] ss:$0 sm:$0xff]  ;;  %s1906_s19 = smov [#allocation11]  }
 0xaf2   :  { %s1356_s9 = sshll.u32 %s1906_s19, 4  ;;  %s1357_s9 = int_to_ptr.vmem [resolvable:$true] %s1356_s9 }
 0xaf3   :  { %s1860_s10 = scalar_lea.vmem %s1357_s9, 32  ;;  %p1865_p8 = scmp.lt.s32.totalorder %s1357_s9, %s1357_s9 }
 0xaf4   :  { %p1861_p7 = scmp.ne.s32.totalorder %s1357_s9, %s1860_s10  ;;  %p1866_p9 = scmp.lt.s32.totalorder %s1860_s10, %s1860_s10 }
 0xaf6   :  { %p1867_p10 = por %p1866_p9, %p1865_p8 }
 0xaf8   :  { %p1868_p11 = pnand %p1867_p10, %p1861_p7 }
 0xb9f   :  { %v1321_v58 = vpop.f32.mrf.mxu0 }
 0xba0   :  { %v1322_v59 = vadd.f32 %v1321_v58, %v2192_v33 }
 0xba1   :  { %v1672_v60 = vpop.f32.mrf.mxu0 }
 0xba2   :  { %v1331_v61 = vadd.f32 %v1417_v0, %v1322_v59 }
 0xba4   :  { %1349 = vst.msk [vmem:[#allocation11] sm:$0x3] %vm1333_vm6, %v1331_v61 }
 0xba5   :  { %1871 = shalt.err (!%p1868_p11)
}
 0xba6   :  { %1359 = dma.vmem_to_hbm [thread:$0]  %s1357_s9, 32, %s2244_s18, [#allocation4]  }
 0xba7   :  { %1886 = dma.done.wait [#allocation4], 32  }
 0xba8   :  { %1887 = vsyncadd [#allocation4], 4294967264 }
 0xba9   :  { %1888 = dma.done.wait [#allocation13], 128  }
 0xbaa   :  { %1889 = vsyncadd [#allocation13], 4294967168 }
 0xbab   :  { %1393 = vsyncpa [#allocation3], 1 }
 0xbac   :  { %1394 = vsyncpa [#allocation6], 1 }
 0xbad   :  { %1395 = vsyncpa [#allocation9], 1 }
 0xbae   :  { %1396 = vsyncpa [#allocation4], 1 }
 0xbaf   :  { %1397 = vsyncpa [#allocation13], 1 }

</bundles_post_ra>
